<compile_context>
chip_gen: v7x
topology: tpu7x:2x2x1
jax: 0.10.0
libtpu: 0.0.40
codegen_flags: <defaults>
</compile_context>

<pallas_src>
import jax
import jax.numpy as jnp
import numpy as np
from jax.experimental import pallas as pl
from jax.experimental.pallas import tpu as pltpu


# ---------------------------------------------------------------------------
# Kernel
# ---------------------------------------------------------------------------

def _sigmoid(z):
    # exp + div only (EUP / VPU); avoids depending on a logistic lowering rule.
    return 1.0 / (1.0 + jnp.exp(-z))


def _ola_kernel(x_ref, masks_ref, w1_ref, b1_ref, w2_ref, b2_ref, wl_ref, bl_ref,
                out_ref):
    """Fused OverlappedLocalAttention forward for one batch tile.

    x_ref   : (Bt, C, P)    image tile, spatial flattened onto the lane axis
    masks   : (4, P)        per-patch window masks, pre-scaled by 1/patch_size
    w1/w2   : (4, C, C)     1x1-conv weights, (in -> out) layout per patch
    b1/b2   : (4, 1, C)
    wl      : (4, C, NCp)   final linear weight, per-patch slabs, lane-padded
    bl      : (1, NCp)
    out     : (Bt, NCp)     lane-padded logits
    """
    C = x_ref.shape[1]
    inv_c = 1.0 / float(C)

    x = x_ref[...].astype(jnp.float32)            # single f32 copy of the tile
    masks = masks_ref[...]                        # (4, P)

    # --- AdaptiveAvgPool over each overlapping window: full-vreg lane reduces ---
    pooled = [jnp.sum(x * masks[i:i + 1, :], axis=-1) for i in range(4)]  # 4x(Bt,C)
    pooled_stk = jnp.stack(pooled, axis=0)                                # (4,Bt,C)

    # --- squeeze/excite: conv1 -> relu -> conv2 -> sigmoid, one batched matmul
    #     per layer (batch axis = the 4 patches, M = Bt).  Operands kept f32;
    #     for large C these could be cast to bf16 with f32 accumulation. ---
    h = jnp.einsum('ibc,icd->ibd', pooled_stk, w1_ref[...],
                   preferred_element_type=jnp.float32) + b1_ref[...]
    h = jnp.maximum(h, 0.0)
    s = _sigmoid(jnp.einsum('ibc,icd->ibd', h, w2_ref[...],
                            preferred_element_type=jnp.float32) + b2_ref[...])  # (4,Bt,C)

    # --- factored channel + spatial attention:
    #       feat_i = s_i * mean_{p in patch}( sigmoid(mean_c(s_i * x)) * x )
    #     No full channel/spatial-attention tensors are kept live. ---
    feats = []
    for i in range(4):                                        # static unroll, 4 patches
        s_i = s[i]                                            # (Bt, C)
        m = masks[i:i + 1, :]                                 # (1, P), scaled by 1/P_i
        t = _sigmoid(jnp.sum(s_i[:, :, None] * x, axis=1, keepdims=True) * inv_c)  # (Bt,1,P)
        inner = jnp.sum((t * m) * x, axis=-1)                 # (Bt, C) masked spatial mean
        feats.append(s_i * inner)
    feat_stk = jnp.stack(feats, axis=0)                       # (4,Bt,C)

    # --- final Linear: per-patch weight slabs, reduced over the patch axis ---
    contrib = jnp.einsum('ibc,icn->ibn', feat_stk, wl_ref[...],
                         preferred_element_type=jnp.float32)  # (4,Bt,NCp)
    out_ref[...] = jnp.sum(contrib, axis=0) + bl_ref[...]


# ---------------------------------------------------------------------------
# Wrapper
# ---------------------------------------------------------------------------

def _patch_bounds(H, W):
    """Static patch windows, matching the PyTorch round()-based slicing."""
    heights = [round(H / 3 * i) for i in range(1, 4)]
    widths = [round(W / 3 * i) for i in range(1, 4)]
    return [
        (0, heights[1], 0, widths[1]),
        (0, heights[1], widths[0], widths[2]),
        (heights[0], heights[2], 0, widths[1]),
        (heights[0], heights[2], widths[0], widths[2]),
    ]


def _patch_masks(H, W):
    """(4, H*W) f32 masks over the flattened spatial axis, scaled by 1/patch_size."""
    masks = np.zeros((4, H * W), np.float32)
    for i, (r0, r1, c0, c1) in enumerate(_patch_bounds(H, W)):
        m = np.zeros((H, W), np.float32)
        m[r0:r1, c0:c1] = 1.0 / float((r1 - r0) * (c1 - c0))
        masks[i] = m.reshape(-1)
    return jnp.asarray(masks)


def _pick_batch_tile(B, C, P, x_itemsize, weight_bytes, nc_pad, vmem_budget_bytes):
    """Batch tile derived from a VMEM budget (generation-safe: budget < 64 MiB)."""
    per_row = (2 * C * P * x_itemsize      # double-buffered streamed input tile
               + 3 * C * P * 4             # f32 cast of the tile + ~2 live elementwise temps
               + 6 * P * 4                 # per-patch spatial vectors (t, masked weights)
               + 2 * nc_pad * 4            # double-buffered output block
               + 512)
    avail = vmem_budget_bytes - 2 * weight_bytes        # weight slabs are double-buffered
    cap = max(8, (max(avail, 8 * per_row) // per_row) // 8 * 8)
    if B <= cap:
        # v7x has 2 TensorCores: prefer >=2 grid steps when that keeps the batch
        # tile a multiple of 8 (output sublane constraint).
        if B >= 16 and B % 16 == 0 and (B // 2) <= cap:
            return B // 2
        return B
    return int(cap)


def overlapped_local_attention(x, params, *, batch_tile=None,
                               stream_dtype=jnp.bfloat16,
                               vmem_budget_bytes=40 * 1024 * 1024):
    """x: (B, C, H, W) NCHW.  Returns (B, num_classes) f32."""
    w1, b1, w2, b2, wl, bl = params
    B, C, H, W = x.shape
    NC = wl.shape[0]
    P = H * W
    NCp = max(128, ((NC + 127) // 128) * 128)       # lane-dense output block

    # --- constants / weight pre-layout (done once, outside the kernel) ---
    masks = _patch_masks(H, W)                          # (4, P)
    w1t = jnp.transpose(w1, (0, 2, 1)).astype(jnp.float32)   # (4, C_in, C_out)
    w2t = jnp.transpose(w2, (0, 2, 1)).astype(jnp.float32)
    b1r = b1.reshape(4, 1, C).astype(jnp.float32)
    b2r = b2.reshape(4, 1, C).astype(jnp.float32)
    wl_stk = jnp.transpose(wl.reshape(NC, 4, C), (1, 2, 0))  # (4, C, NC), patch-major
    wl_stk = jnp.pad(wl_stk, ((0, 0), (0, 0), (0, NCp - NC))).astype(jnp.float32)
    bl_pad = jnp.pad(bl.reshape(1, NC), ((0, 0), (0, NCp - NC))).astype(jnp.float32)

    weight_bytes = sum(int(np.prod(a.shape)) * 4
                       for a in (masks, w1t, b1r, w2t, b2r, wl_stk, bl_pad))

    # --- lane-dense, bf16-streamed image (in-kernel math is f32) ---
    x_k = x.reshape(B, C, P).astype(stream_dtype)
    x_itemsize = jnp.dtype(stream_dtype).itemsize

    if batch_tile is not None:
        if batch_tile <= 0 or (batch_tile % 8 != 0 and batch_tile != B):
            raise ValueError("batch_tile must be a multiple of 8 or equal to B")
        Bt = int(batch_tile)
    else:
        Bt = _pick_batch_tile(B, C, P, x_itemsize, weight_bytes, NCp,
                              vmem_budget_bytes)

    # Tail handling: never silently drop rows that do not fill a tile.
    nsteps = -(-B // Bt)
    B_pad = nsteps * Bt
    if B_pad != B:
        x_k = jnp.pad(x_k, ((0, B_pad - B), (0, 0), (0, 0)))

    out = pl.pallas_call(
        _ola_kernel,
        out_shape=jax.ShapeDtypeStruct((B_pad, NCp), jnp.float32),
        grid_spec=pltpu.PrefetchScalarGridSpec(
            num_scalar_prefetch=0,
            grid=(nsteps,),
            in_specs=[
                pl.BlockSpec((Bt, C, P), lambda b: (b, 0, 0)),    # image tile
                pl.BlockSpec((4, P), lambda b: (0, 0)),           # patch masks
                pl.BlockSpec((4, C, C), lambda b: (0, 0, 0)),     # conv1 weights
                pl.BlockSpec((4, 1, C), lambda b: (0, 0, 0)),     # conv1 bias
                pl.BlockSpec((4, C, C), lambda b: (0, 0, 0)),     # conv2 weights
                pl.BlockSpec((4, 1, C), lambda b: (0, 0, 0)),     # conv2 bias
                pl.BlockSpec((4, C, NCp), lambda b: (0, 0, 0)),   # linear weight slabs
                pl.BlockSpec((1, NCp), lambda b: (0, 0)),         # linear bias
            ],
            out_specs=pl.BlockSpec((Bt, NCp), lambda b: (b, 0)),
        ),
        compiler_params=pltpu.CompilerParams(
            dimension_semantics=("parallel",),
            vmem_limit_bytes=48 * 1024 * 1024),
    )(x_k, masks, w1t, b1r, w2t, b2r, wl_stk, bl_pad)

    return out[:B, :NC]


# ---------------------------------------------------------------------------
# Pure-JAX reference (mirrors the PyTorch forward) and parameter init
# ---------------------------------------------------------------------------

def reference(x, params):
    w1, b1, w2, b2, wl, bl = params
    B, C, H, W = x.shape
    feats = []
    for i, (r0, r1, c0, c1) in enumerate(_patch_bounds(H, W)):
        p = x[:, :, r0:r1, c0:c1]
        pooled = p.mean(axis=(2, 3))                                   # (B, C)
        h = jnp.maximum(pooled @ w1[i].T + b1[i], 0.0)
        s = jax.nn.sigmoid(h @ w2[i].T + b2[i])
        ca = s[:, :, None, None] * p                                   # (B, C, Hp, Wp)
        m = jax.nn.sigmoid(ca.mean(axis=1, keepdims=True))
        sa = m * ca
        feats.append(sa.mean(axis=(2, 3)))                             # (B, C)
    f = jnp.concatenate(feats, axis=1)                                 # (B, 4C)
    return f @ wl.T + bl[0]


def init_params(key, in_channels, num_classes):
    ks = jax.random.split(key, 6)
    C = in_channels
    w1 = 0.3 * jax.random.normal(ks[0], (4, C, C), jnp.float32)
    b1 = 0.1 * jax.random.normal(ks[1], (4, C), jnp.float32)
    w2 = 0.3 * jax.random.normal(ks[2], (4, C, C), jnp.float32)
    b2 = 0.1 * jax.random.normal(ks[3], (4, C), jnp.float32)
    wl = 0.2 * jax.random.normal(ks[4], (num_classes, 4 * C), jnp.float32)
    bl = 0.1 * jax.random.normal(ks[5], (1, num_classes), jnp.float32)
    return (w1, b1, w2, b2, wl, bl)


if __name__ == "__main__":
    key = jax.random.PRNGKey(0)
    kx, kp = jax.random.split(key)

    B, C, H, W = 2, 4, 16, 16
    num_classes = 5

    x = jax.random.normal(kx, (B, C, H, W), jnp.float32)
    params = init_params(kp, C, num_classes)

    out = jax.block_until_ready(jax.jit(overlapped_local_attention)(x, params))

    # The kernel streams x as bf16; compare against the pure-JAX f32 reference
    # evaluated on the identically quantized input (remaining delta = matmul
    # precision / summation order only).
    x_q = x.astype(jnp.bfloat16).astype(jnp.float32)
    ref = jax.block_until_ready(reference(x_q, params))
    np.testing.assert_allclose(np.asarray(out), np.asarray(ref), rtol=1e-2, atol=1e-3)

    print("KERNEL_OK")
</pallas_src>

<mosaic_0001>
module attributes {stable_mosaic.version = 11 : i64} {
  func.func @_ola_kernel(%arg0: i32, %arg1: memref<2x4x256xbf16, #tpu.memory_space<vmem>>, %arg2: memref<4x256xf32, #tpu.memory_space<vmem>>, %arg3: memref<4x4x4xf32, #tpu.memory_space<vmem>>, %arg4: memref<4x1x4xf32, #tpu.memory_space<vmem>>, %arg5: memref<4x4x4xf32, #tpu.memory_space<vmem>>, %arg6: memref<4x1x4xf32, #tpu.memory_space<vmem>>, %arg7: memref<4x4x128xf32, #tpu.memory_space<vmem>>, %arg8: memref<1x128xf32, #tpu.memory_space<vmem>>, %arg9: memref<2x128xf32, #tpu.memory_space<vmem>>) attributes {dimension_semantics = [#tpu.dimension_semantics<parallel>], iteration_bounds = array<i64: 1>, scalar_prefetch = 0 : i64, scratch_operands = 0 : i64, tpu.core_type = #tpu.core_type<tc>, window_params = [{transform_indices = @transform_0, window_bounds = array<i64: 2, 4, 256>}, {pipeline_mode = #tpu.pipeline_mode<synchronous>, transform_indices = @transform_1, window_bounds = array<i64: 4, 256>}, {pipeline_mode = #tpu.pipeline_mode<synchronous>, transform_indices = @transform_2, window_bounds = array<i64: 4, 4, 4>}, {pipeline_mode = #tpu.pipeline_mode<synchronous>, transform_indices = @transform_3, window_bounds = array<i64: 4, 1, 4>}, {pipeline_mode = #tpu.pipeline_mode<synchronous>, transform_indices = @transform_4, window_bounds = array<i64: 4, 4, 4>}, {pipeline_mode = #tpu.pipeline_mode<synchronous>, transform_indices = @transform_5, window_bounds = array<i64: 4, 1, 4>}, {pipeline_mode = #tpu.pipeline_mode<synchronous>, transform_indices = @transform_6, window_bounds = array<i64: 4, 4, 128>}, {pipeline_mode = #tpu.pipeline_mode<synchronous>, transform_indices = @transform_7, window_bounds = array<i64: 1, 128>}, {transform_indices = @transform_8, window_bounds = array<i64: 2, 128>}]} {
    %c0 = arith.constant 0 : index
    %c0_0 = arith.constant 0 : index
    %c0_1 = arith.constant 0 : index
    %0 = vector.load %arg1[%c0, %c0_0, %c0_1] : memref<2x4x256xbf16, #tpu.memory_space<vmem>>, vector<2x4x256xbf16>
    %1 = arith.extf %0 : vector<2x4x256xbf16> to vector<2x4x256xf32>
    %c0_2 = arith.constant 0 : index
    %c0_3 = arith.constant 0 : index
    %2 = vector.load %arg2[%c0_2, %c0_3] : memref<4x256xf32, #tpu.memory_space<vmem>>, vector<4x256xf32>
    %3 = vector.extract_strided_slice %2 {offsets = [0, 0], sizes = [1, 256], strides = [1, 1]} : vector<4x256xf32> to vector<1x256xf32>
    %4 = vector.shape_cast %3 : vector<1x256xf32> to vector<1x1x256xf32>
    %5 = vector.broadcast %4 : vector<1x1x256xf32> to vector<2x4x256xf32>
    %6 = arith.mulf %1, %5 : vector<2x4x256xf32>
    %cst = arith.constant dense<0.000000e+00> : vector<2x4xf32>
    %7 = vector.multi_reduction <add>, %6, %cst [2] : vector<2x4x256xf32> to vector<2x4xf32>
    %8 = vector.extract_strided_slice %2 {offsets = [1, 0], sizes = [1, 256], strides = [1, 1]} : vector<4x256xf32> to vector<1x256xf32>
    %9 = vector.shape_cast %8 : vector<1x256xf32> to vector<1x1x256xf32>
    %10 = vector.broadcast %9 : vector<1x1x256xf32> to vector<2x4x256xf32>
    %11 = arith.mulf %1, %10 : vector<2x4x256xf32>
    %cst_4 = arith.constant dense<0.000000e+00> : vector<2x4xf32>
    %12 = vector.multi_reduction <add>, %11, %cst_4 [2] : vector<2x4x256xf32> to vector<2x4xf32>
    %13 = vector.extract_strided_slice %2 {offsets = [2, 0], sizes = [1, 256], strides = [1, 1]} : vector<4x256xf32> to vector<1x256xf32>
    %14 = vector.shape_cast %13 : vector<1x256xf32> to vector<1x1x256xf32>
    %15 = vector.broadcast %14 : vector<1x1x256xf32> to vector<2x4x256xf32>
    %16 = arith.mulf %1, %15 : vector<2x4x256xf32>
    %cst_5 = arith.constant dense<0.000000e+00> : vector<2x4xf32>
    %17 = vector.multi_reduction <add>, %16, %cst_5 [2] : vector<2x4x256xf32> to vector<2x4xf32>
    %18 = vector.extract_strided_slice %2 {offsets = [3, 0], sizes = [1, 256], strides = [1, 1]} : vector<4x256xf32> to vector<1x256xf32>
    %19 = vector.shape_cast %18 : vector<1x256xf32> to vector<1x1x256xf32>
    %20 = vector.broadcast %19 : vector<1x1x256xf32> to vector<2x4x256xf32>
    %21 = arith.mulf %1, %20 : vector<2x4x256xf32>
    %cst_6 = arith.constant dense<0.000000e+00> : vector<2x4xf32>
    %22 = vector.multi_reduction <add>, %21, %cst_6 [2] : vector<2x4x256xf32> to vector<2x4xf32>
    %23 = vector.shape_cast %7 : vector<2x4xf32> to vector<1x2x4xf32>
    %24 = vector.shape_cast %12 : vector<2x4xf32> to vector<1x2x4xf32>
    %25 = vector.shape_cast %17 : vector<2x4xf32> to vector<1x2x4xf32>
    %26 = vector.shape_cast %22 : vector<2x4xf32> to vector<1x2x4xf32>
    %27 = tpu.concatenate %23, %24, %25, %26 in 0 : vector<1x2x4xf32>, vector<1x2x4xf32>, vector<1x2x4xf32>, vector<1x2x4xf32> -> vector<4x2x4xf32>
    %c0_7 = arith.constant 0 : index
    %c0_8 = arith.constant 0 : index
    %c0_9 = arith.constant 0 : index
    %28 = vector.load %arg3[%c0_7, %c0_8, %c0_9] : memref<4x4x4xf32, #tpu.memory_space<vmem>>, vector<4x4x4xf32>
    "tpu.trace_start"() <{level = 10 : i32, message = "ibc,icd->ibd"}> : () -> ()
    %cst_10 = arith.constant dense<0.000000e+00> : vector<4x2x4xf32>
    %29 = tpu.matmul %27, %28, %cst_10 {dimension_numbers = #tpu.dot_dimension_numbers<[2], [1], [1], [2], [0, 0, 0, 1, 1, 2], [0], [0]>} : vector<4x2x4xf32>, vector<4x4x4xf32>, vector<4x2x4xf32> -> vector<4x2x4xf32>
    "tpu.trace_stop"() : () -> ()
    %c0_11 = arith.constant 0 : index
    %c0_12 = arith.constant 0 : index
    %c0_13 = arith.constant 0 : index
    %30 = vector.load %arg4[%c0_11, %c0_12, %c0_13] : memref<4x1x4xf32, #tpu.memory_space<vmem>>, vector<4x1x4xf32>
    %31 = vector.broadcast %30 : vector<4x1x4xf32> to vector<4x2x4xf32>
    %32 = arith.addf %29, %31 : vector<4x2x4xf32>
    %cst_14 = arith.constant 0.000000e+00 : f32
    %33 = vector.broadcast %cst_14 : f32 to vector<4x2x4xf32>
    %34 = arith.maximumf %32, %33 : vector<4x2x4xf32>
    %c0_15 = arith.constant 0 : index
    %c0_16 = arith.constant 0 : index
    %c0_17 = arith.constant 0 : index
    %35 = vector.load %arg5[%c0_15, %c0_16, %c0_17] : memref<4x4x4xf32, #tpu.memory_space<vmem>>, vector<4x4x4xf32>
    "tpu.trace_start"() <{level = 10 : i32, message = "ibc,icd->ibd"}> : () -> ()
    %cst_18 = arith.constant dense<0.000000e+00> : vector<4x2x4xf32>
    %36 = tpu.matmul %34, %35, %cst_18 {dimension_numbers = #tpu.dot_dimension_numbers<[2], [1], [1], [2], [0, 0, 0, 1, 1, 2], [0], [0]>} : vector<4x2x4xf32>, vector<4x4x4xf32>, vector<4x2x4xf32> -> vector<4x2x4xf32>
    "tpu.trace_stop"() : () -> ()
    %c0_19 = arith.constant 0 : index
    %c0_20 = arith.constant 0 : index
    %c0_21 = arith.constant 0 : index
    %37 = vector.load %arg6[%c0_19, %c0_20, %c0_21] : memref<4x1x4xf32, #tpu.memory_space<vmem>>, vector<4x1x4xf32>
    %38 = vector.broadcast %37 : vector<4x1x4xf32> to vector<4x2x4xf32>
    %39 = arith.addf %36, %38 : vector<4x2x4xf32>
    %cst_22 = arith.constant 0.000000e+00 : f32
    %40 = vector.broadcast %cst_22 : f32 to vector<4x2x4xf32>
    %41 = arith.subf %40, %39 : vector<4x2x4xf32>
    %42 = math.exp %41 : vector<4x2x4xf32>
    %cst_23 = arith.constant 1.000000e+00 : f32
    %43 = vector.broadcast %cst_23 : f32 to vector<4x2x4xf32>
    %44 = arith.addf %43, %42 : vector<4x2x4xf32>
    %cst_24 = arith.constant 1.000000e+00 : f32
    %45 = vector.broadcast %cst_24 : f32 to vector<4x2x4xf32>
    %46 = arith.divf %45, %44 : vector<4x2x4xf32>
    %47 = vector.extract_strided_slice %46 {offsets = [0, 0, 0], sizes = [1, 2, 4], strides = [1, 1, 1]} : vector<4x2x4xf32> to vector<1x2x4xf32>
    %48 = vector.shape_cast %47 : vector<1x2x4xf32> to vector<2x4xf32>
    %49 = vector.extract_strided_slice %2 {offsets = [0, 0], sizes = [1, 256], strides = [1, 1]} : vector<4x256xf32> to vector<1x256xf32>
    %50 = vector.shape_cast %48 : vector<2x4xf32> to vector<2x4x1xf32>
    %51 = vector.broadcast %50 : vector<2x4x1xf32> to vector<2x4x256xf32>
    %52 = arith.mulf %51, %1 : vector<2x4x256xf32>
    %cst_25 = arith.constant dense<0.000000e+00> : vector<2x256xf32>
    %53 = vector.multi_reduction <add>, %52, %cst_25 [1] : vector<2x4x256xf32> to vector<2x256xf32>
    %54 = vector.shape_cast %53 : vector<2x256xf32> to vector<2x1x256xf32>
    %cst_26 = arith.constant 2.500000e-01 : f32
    %55 = vector.broadcast %cst_26 : f32 to vector<2x1x256xf32>
    %56 = arith.mulf %54, %55 : vector<2x1x256xf32>
    %cst_27 = arith.constant 0.000000e+00 : f32
    %57 = vector.broadcast %cst_27 : f32 to vector<2x1x256xf32>
    %58 = arith.subf %57, %56 : vector<2x1x256xf32>
    %59 = math.exp %58 : vector<2x1x256xf32>
    %cst_28 = arith.constant 1.000000e+00 : f32
    %60 = vector.broadcast %cst_28 : f32 to vector<2x1x256xf32>
    %61 = arith.addf %60, %59 : vector<2x1x256xf32>
    %cst_29 = arith.constant 1.000000e+00 : f32
    %62 = vector.broadcast %cst_29 : f32 to vector<2x1x256xf32>
    %63 = arith.divf %62, %61 : vector<2x1x256xf32>
    %64 = vector.shape_cast %49 : vector<1x256xf32> to vector<1x1x256xf32>
    %65 = vector.broadcast %64 : vector<1x1x256xf32> to vector<2x1x256xf32>
    %66 = arith.mulf %63, %65 : vector<2x1x256xf32>
    %67 = vector.broadcast %66 : vector<2x1x256xf32> to vector<2x4x256xf32>
    %68 = arith.mulf %67, %1 : vector<2x4x256xf32>
    %cst_30 = arith.constant dense<0.000000e+00> : vector<2x4xf32>
    %69 = vector.multi_reduction <add>, %68, %cst_30 [2] : vector<2x4x256xf32> to vector<2x4xf32>
    %70 = arith.mulf %48, %69 : vector<2x4xf32>
    %71 = vector.extract_strided_slice %46 {offsets = [1, 0, 0], sizes = [1, 2, 4], strides = [1, 1, 1]} : vector<4x2x4xf32> to vector<1x2x4xf32>
    %72 = vector.shape_cast %71 : vector<1x2x4xf32> to vector<2x4xf32>
    %73 = vector.extract_strided_slice %2 {offsets = [1, 0], sizes = [1, 256], strides = [1, 1]} : vector<4x256xf32> to vector<1x256xf32>
    %74 = vector.shape_cast %72 : vector<2x4xf32> to vector<2x4x1xf32>
    %75 = vector.broadcast %74 : vector<2x4x1xf32> to vector<2x4x256xf32>
    %76 = arith.mulf %75, %1 : vector<2x4x256xf32>
    %cst_31 = arith.constant dense<0.000000e+00> : vector<2x256xf32>
    %77 = vector.multi_reduction <add>, %76, %cst_31 [1] : vector<2x4x256xf32> to vector<2x256xf32>
    %78 = vector.shape_cast %77 : vector<2x256xf32> to vector<2x1x256xf32>
    %cst_32 = arith.constant 2.500000e-01 : f32
    %79 = vector.broadcast %cst_32 : f32 to vector<2x1x256xf32>
    %80 = arith.mulf %78, %79 : vector<2x1x256xf32>
    %cst_33 = arith.constant 0.000000e+00 : f32
    %81 = vector.broadcast %cst_33 : f32 to vector<2x1x256xf32>
    %82 = arith.subf %81, %80 : vector<2x1x256xf32>
    %83 = math.exp %82 : vector<2x1x256xf32>
    %cst_34 = arith.constant 1.000000e+00 : f32
    %84 = vector.broadcast %cst_34 : f32 to vector<2x1x256xf32>
    %85 = arith.addf %84, %83 : vector<2x1x256xf32>
    %cst_35 = arith.constant 1.000000e+00 : f32
    %86 = vector.broadcast %cst_35 : f32 to vector<2x1x256xf32>
    %87 = arith.divf %86, %85 : vector<2x1x256xf32>
    %88 = vector.shape_cast %73 : vector<1x256xf32> to vector<1x1x256xf32>
    %89 = vector.broadcast %88 : vector<1x1x256xf32> to vector<2x1x256xf32>
    %90 = arith.mulf %87, %89 : vector<2x1x256xf32>
    %91 = vector.broadcast %90 : vector<2x1x256xf32> to vector<2x4x256xf32>
    %92 = arith.mulf %91, %1 : vector<2x4x256xf32>
    %cst_36 = arith.constant dense<0.000000e+00> : vector<2x4xf32>
    %93 = vector.multi_reduction <add>, %92, %cst_36 [2] : vector<2x4x256xf32> to vector<2x4xf32>
    %94 = arith.mulf %72, %93 : vector<2x4xf32>
    %95 = vector.extract_strided_slice %46 {offsets = [2, 0, 0], sizes = [1, 2, 4], strides = [1, 1, 1]} : vector<4x2x4xf32> to vector<1x2x4xf32>
    %96 = vector.shape_cast %95 : vector<1x2x4xf32> to vector<2x4xf32>
    %97 = vector.extract_strided_slice %2 {offsets = [2, 0], sizes = [1, 256], strides = [1, 1]} : vector<4x256xf32> to vector<1x256xf32>
    %98 = vector.shape_cast %96 : vector<2x4xf32> to vector<2x4x1xf32>
    %99 = vector.broadcast %98 : vector<2x4x1xf32> to vector<2x4x256xf32>
    %100 = arith.mulf %99, %1 : vector<2x4x256xf32>
    %cst_37 = arith.constant dense<0.000000e+00> : vector<2x256xf32>
    %101 = vector.multi_reduction <add>, %100, %cst_37 [1] : vector<2x4x256xf32> to vector<2x256xf32>
    %102 = vector.shape_cast %101 : vector<2x256xf32> to vector<2x1x256xf32>
    %cst_38 = arith.constant 2.500000e-01 : f32
    %103 = vector.broadcast %cst_38 : f32 to vector<2x1x256xf32>
    %104 = arith.mulf %102, %103 : vector<2x1x256xf32>
    %cst_39 = arith.constant 0.000000e+00 : f32
    %105 = vector.broadcast %cst_39 : f32 to vector<2x1x256xf32>
    %106 = arith.subf %105, %104 : vector<2x1x256xf32>
    %107 = math.exp %106 : vector<2x1x256xf32>
    %cst_40 = arith.constant 1.000000e+00 : f32
    %108 = vector.broadcast %cst_40 : f32 to vector<2x1x256xf32>
    %109 = arith.addf %108, %107 : vector<2x1x256xf32>
    %cst_41 = arith.constant 1.000000e+00 : f32
    %110 = vector.broadcast %cst_41 : f32 to vector<2x1x256xf32>
    %111 = arith.divf %110, %109 : vector<2x1x256xf32>
    %112 = vector.shape_cast %97 : vector<1x256xf32> to vector<1x1x256xf32>
    %113 = vector.broadcast %112 : vector<1x1x256xf32> to vector<2x1x256xf32>
    %114 = arith.mulf %111, %113 : vector<2x1x256xf32>
    %115 = vector.broadcast %114 : vector<2x1x256xf32> to vector<2x4x256xf32>
    %116 = arith.mulf %115, %1 : vector<2x4x256xf32>
    %cst_42 = arith.constant dense<0.000000e+00> : vector<2x4xf32>
    %117 = vector.multi_reduction <add>, %116, %cst_42 [2] : vector<2x4x256xf32> to vector<2x4xf32>
    %118 = arith.mulf %96, %117 : vector<2x4xf32>
    %119 = vector.extract_strided_slice %46 {offsets = [3, 0, 0], sizes = [1, 2, 4], strides = [1, 1, 1]} : vector<4x2x4xf32> to vector<1x2x4xf32>
    %120 = vector.shape_cast %119 : vector<1x2x4xf32> to vector<2x4xf32>
    %121 = vector.extract_strided_slice %2 {offsets = [3, 0], sizes = [1, 256], strides = [1, 1]} : vector<4x256xf32> to vector<1x256xf32>
    %122 = vector.shape_cast %120 : vector<2x4xf32> to vector<2x4x1xf32>
    %123 = vector.broadcast %122 : vector<2x4x1xf32> to vector<2x4x256xf32>
    %124 = arith.mulf %123, %1 : vector<2x4x256xf32>
    %cst_43 = arith.constant dense<0.000000e+00> : vector<2x256xf32>
    %125 = vector.multi_reduction <add>, %124, %cst_43 [1] : vector<2x4x256xf32> to vector<2x256xf32>
    %126 = vector.shape_cast %125 : vector<2x256xf32> to vector<2x1x256xf32>
    %cst_44 = arith.constant 2.500000e-01 : f32
    %127 = vector.broadcast %cst_44 : f32 to vector<2x1x256xf32>
    %128 = arith.mulf %126, %127 : vector<2x1x256xf32>
    %cst_45 = arith.constant 0.000000e+00 : f32
    %129 = vector.broadcast %cst_45 : f32 to vector<2x1x256xf32>
    %130 = arith.subf %129, %128 : vector<2x1x256xf32>
    %131 = math.exp %130 : vector<2x1x256xf32>
    %cst_46 = arith.constant 1.000000e+00 : f32
    %132 = vector.broadcast %cst_46 : f32 to vector<2x1x256xf32>
    %133 = arith.addf %132, %131 : vector<2x1x256xf32>
    %cst_47 = arith.constant 1.000000e+00 : f32
    %134 = vector.broadcast %cst_47 : f32 to vector<2x1x256xf32>
    %135 = arith.divf %134, %133 : vector<2x1x256xf32>
    %136 = vector.shape_cast %121 : vector<1x256xf32> to vector<1x1x256xf32>
    %137 = vector.broadcast %136 : vector<1x1x256xf32> to vector<2x1x256xf32>
    %138 = arith.mulf %135, %137 : vector<2x1x256xf32>
    %139 = vector.broadcast %138 : vector<2x1x256xf32> to vector<2x4x256xf32>
    %140 = arith.mulf %139, %1 : vector<2x4x256xf32>
    %cst_48 = arith.constant dense<0.000000e+00> : vector<2x4xf32>
    %141 = vector.multi_reduction <add>, %140, %cst_48 [2] : vector<2x4x256xf32> to vector<2x4xf32>
    %142 = arith.mulf %120, %141 : vector<2x4xf32>
    %143 = vector.shape_cast %70 : vector<2x4xf32> to vector<1x2x4xf32>
    %144 = vector.shape_cast %94 : vector<2x4xf32> to vector<1x2x4xf32>
    %145 = vector.shape_cast %118 : vector<2x4xf32> to vector<1x2x4xf32>
    %146 = vector.shape_cast %142 : vector<2x4xf32> to vector<1x2x4xf32>
    %147 = tpu.concatenate %143, %144, %145, %146 in 0 : vector<1x2x4xf32>, vector<1x2x4xf32>, vector<1x2x4xf32>, vector<1x2x4xf32> -> vector<4x2x4xf32>
    %c0_49 = arith.constant 0 : index
    %c0_50 = arith.constant 0 : index
    %c0_51 = arith.constant 0 : index
    %148 = vector.load %arg7[%c0_49, %c0_50, %c0_51] : memref<4x4x128xf32, #tpu.memory_space<vmem>>, vector<4x4x128xf32>
    "tpu.trace_start"() <{level = 10 : i32, message = "ibc,icn->ibn"}> : () -> ()
    %cst_52 = arith.constant dense<0.000000e+00> : vector<4x2x128xf32>
    %149 = tpu.matmul %147, %148, %cst_52 {dimension_numbers = #tpu.dot_dimension_numbers<[2], [1], [1], [2], [0, 0, 0, 1, 1, 2], [0], [0]>} : vector<4x2x4xf32>, vector<4x4x128xf32>, vector<4x2x128xf32> -> vector<4x2x128xf32>
    "tpu.trace_stop"() : () -> ()
    %cst_53 = arith.constant dense<0.000000e+00> : vector<2x128xf32>
    %150 = vector.multi_reduction <add>, %149, %cst_53 [0] : vector<4x2x128xf32> to vector<2x128xf32>
    %c0_54 = arith.constant 0 : index
    %c0_55 = arith.constant 0 : index
    %151 = vector.load %arg8[%c0_54, %c0_55] : memref<1x128xf32, #tpu.memory_space<vmem>>, vector<1x128xf32>
    %152 = vector.broadcast %151 : vector<1x128xf32> to vector<2x128xf32>
    %153 = arith.addf %150, %152 : vector<2x128xf32>
    %c0_56 = arith.constant 0 : index
    %c0_57 = arith.constant 0 : index
    %154 = vector.load %arg9[%c0_56, %c0_57] : memref<2x128xf32, #tpu.memory_space<vmem>>, vector<2x128xf32>
    tpu.vector_store %arg9[%c0_56, %c0_57], %153 {strides = array<i32>} : memref<2x128xf32, #tpu.memory_space<vmem>>, vector<2x128xf32>,
    return
  }
  func.func @transform_0(%arg0: i32) -> (i32, i32, i32) {
    %c0_i32 = arith.constant 0 : i32
    %c0_i32_0 = arith.constant 0 : i32
    %c0_i32_1 = arith.constant 0 : i32
    return %arg0, %c0_i32, %c0_i32_0 : i32, i32, i32
  }
  func.func @transform_1(%arg0: i32) -> (i32, i32) {
    %c0_i32 = arith.constant 0 : i32
    %c0_i32_0 = arith.constant 0 : i32
    %c0_i32_1 = arith.constant 0 : i32
    return %c0_i32, %c0_i32_0 : i32, i32
  }
  func.func @transform_2(%arg0: i32) -> (i32, i32, i32) {
    %c0_i32 = arith.constant 0 : i32
    %c0_i32_0 = arith.constant 0 : i32
    %c0_i32_1 = arith.constant 0 : i32
    %c0_i32_2 = arith.constant 0 : i32
    return %c0_i32, %c0_i32_0, %c0_i32_1 : i32, i32, i32
  }
  func.func @transform_3(%arg0: i32) -> (i32, i32, i32) {
    %c0_i32 = arith.constant 0 : i32
    %c0_i32_0 = arith.constant 0 : i32
    %c0_i32_1 = arith.constant 0 : i32
    %c0_i32_2 = arith.constant 0 : i32
    return %c0_i32, %c0_i32_0, %c0_i32_1 : i32, i32, i32
  }
  func.func @transform_4(%arg0: i32) -> (i32, i32, i32) {
    %c0_i32 = arith.constant 0 : i32
    %c0_i32_0 = arith.constant 0 : i32
    %c0_i32_1 = arith.constant 0 : i32
    %c0_i32_2 = arith.constant 0 : i32
    return %c0_i32, %c0_i32_0, %c0_i32_1 : i32, i32, i32
  }
  func.func @transform_5(%arg0: i32) -> (i32, i32, i32) {
    %c0_i32 = arith.constant 0 : i32
    %c0_i32_0 = arith.constant 0 : i32
    %c0_i32_1 = arith.constant 0 : i32
    %c0_i32_2 = arith.constant 0 : i32
    return %c0_i32, %c0_i32_0, %c0_i32_1 : i32, i32, i32
  }
  func.func @transform_6(%arg0: i32) -> (i32, i32, i32) {
    %c0_i32 = arith.constant 0 : i32
    %c0_i32_0 = arith.constant 0 : i32
    %c0_i32_1 = arith.constant 0 : i32
    %c0_i32_2 = arith.constant 0 : i32
    return %c0_i32, %c0_i32_0, %c0_i32_1 : i32, i32, i32
  }
  func.func @transform_7(%arg0: i32) -> (i32, i32) {
    %c0_i32 = arith.constant 0 : i32
    %c0_i32_0 = arith.constant 0 : i32
    %c0_i32_1 = arith.constant 0 : i32
    return %c0_i32, %c0_i32_0 : i32, i32
  }
  func.func @transform_8(%arg0: i32) -> (i32, i32) {
    %c0_i32 = arith.constant 0 : i32
    %c0_i32_0 = arith.constant 0 : i32
    return %arg0, %c0_i32 : i32, i32
  }
}

</mosaic_0001>

<bundles_post_ra>
// kernel: overlapped_local_attention.1
= control target key start
LH: loop header
LB: loop body
LE: loop exit
PB: predicated region body
PF: predicated region fallthrough
CT: control target
= control target key end

     0   :  { %v36_v1 = vlaneseq  ;;  %s2435_s0 = inlined_call_operand.vmem [shape: bf16[2,4,256], index: 0, kind: input, shape index: {}]   ;;  %s2436_s1 = inlined_call_operand.vmem [shape: f32[4,256], index: 1, kind: input, shape index: {}]   ;;  %s2437_s2 = inlined_call_operand.vmem [shape: f32[4,4,4], index: 2, kind: input, shape index: {}]   ;;  %s2438_s3 = inlined_call_operand.vmem [shape: f32[4,1,4], index: 3, kind: input, shape index: {}]   ;;  %s2439_s4 = inlined_call_operand.vmem [shape: f32[4,4,4], index: 4, kind: input, shape index: {}]   ;;  %s2440_s5 = inlined_call_operand.vmem [shape: f32[4,1,4], index: 5, kind: input, shape index: {}]   ;;  %s2441_s6 = inlined_call_operand.vmem [shape: f32[4,4,128], index: 6, kind: input, shape index: {}]   ;;  %s2442_s7 = inlined_call_operand.vmem [shape: f32[1,128], index: 7, kind: input, shape index: {}]   ;;  %s2443_s8 = inlined_call_operand.hbm [shape: f32[2,128], index: 8, kind: output, shape index: {}]  }
   0x1   :  { %v1828_v0 = vld [vmem:[%s2435_s0] sm:$0xff]  }
   0x2   :  { %13 = vsyncpa [#allocation3], 0  ;;  %v2025_v2 = vmov 0   ;;  %v37_v3 = vshrl.u32 %v36_v1, 7  ;;  %v238_v4 = vand.u32 127, %v36_v1  ;;  %v2077_v5 = vunpack.c.l.bf16 %v1828_v0  ;;  %v34_v6 = vld [vmem:[%s2436_s1] sm:$0xff] }
   0x3   :  { %1919 = vset.pattern.permute.xlu0 %v2025_v2  ;;  %1920 = vset.pattern.permute.xlu1 %v2025_v2  ;;  %v2082_v7 = vunpack.c.h.bf16 %v1828_v0  ;;  %vm66_vm0 = vcmask 1043456   ;;  %vm2027_vm1 = vmmov 0   ;;  %vm247_vm2 = vcmask 1041409   ;;  %s2028_s19 = smov [#allocation2]  }
   0x4   :  { %v2084_v8 = vsub.s32 0, %v37_v3  ;;  %v42_v9 = vsub.s32 4, %v37_v3  ;;  %v2086_v10 = vsub.s32 %v238_v4, %v37_v3  ;;  %v2088_v11 = vsub.s32 1, %v37_v3  ;;  %s1786_s20 = sshll.u32 %s2028_s19, 4  ;;  %s1787_s20 = int_to_ptr.vmem [resolvable:$true] %s1786_s20 }
   0x5   :  { %v83_v12 = vsub.s32 5, %v37_v3  ;;  %v119_v13 = vsub.s32 2, %v37_v3  ;;  %v123_v14 = vsub.s32 6, %v37_v3  ;;  %v159_v15 = vsub.s32 3, %v37_v3  ;;  %s2001_s21 = scalar_lea.vmem %s1787_s20, 32  ;;  %p2006_p1 = scmp.lt.s32.totalorder %s1787_s20, %s1787_s20 }
   0x6   :  { %v2091_v16 = vrot.slane %v34_v6, %v2084_v8  ;;  %v2093_v17 = vrot.slane %v34_v6, %v42_v9  ;;  %v2096_v18 = vrot.slane %v34_v6, %v2088_v11  ;;  %v163_v19 = vsub.s32 7, %v37_v3  ;;  %p2002_p0 = scmp.ne.s32.totalorder %s1787_s20, %s2001_s21  ;;  %p2007_p2 = scmp.lt.s32.totalorder %s2001_s21, %s2001_s21 }
   0x7   :  { %v2098_v20 = vrot.slane %v34_v6, %v83_v12  ;;  %v2100_v21 = vrot.slane %v34_v6, %v119_v13  ;;  %v2102_v22 = vrot.slane %v34_v6, %v123_v14  ;;  %v2104_v23 = vrot.slane %v34_v6, %v159_v15 }
   0x8   :  { %v49_v24 = vrot.slane %v2091_v16, %v2084_v8  ;;  %v53_v25 = vrot.slane %v2093_v17, %v2084_v8  ;;  %v90_v26 = vrot.slane %v2096_v18, %v2088_v11  ;;  %v2112_v27 = vrot.slane %v34_v6, %v163_v19  ;;  %p2008_p3 = por %p2007_p2, %p2006_p1 }
   0x9   :  { %v94_v28 = vrot.slane %v2098_v20, %v2088_v11  ;;  %v130_v29 = vrot.slane %v2100_v21, %v119_v13  ;;  %v134_v30 = vrot.slane %v2102_v22, %v119_v13  ;;  %v170_v34 = vrot.slane %v2104_v23, %v159_v15 }
   0xa   :  { %v56_v31 = vcombine.low %v49_v24, %v53_v25  ;;  %v174_v35 = vrot.slane %v2112_v27, %v159_v15  ;;  %vm249_vm3 = vcmask 31744   ;;  %vm1763_vm4 = vcmask 1041408   ;;  %p2009_p4 = pnand %p2008_p3, %p2002_p0 }
   0xb   :  { %v97_v32 = vcombine.low %v90_v26, %v94_v28  ;;  %v137_v33 = vcombine.low %v130_v29, %v134_v30  ;;  %v197_v29 = vld [vmem:[%s2437_s2] sm:$0xf]  ;;  %v2026_v30 = vmov 0.0  }
   0xc   :  { %v58_v36 = vmul.f32 %v2077_v5, %v56_v31  ;;  %v59_v37 = vmul.f32 %v2082_v7, %v56_v31  ;;  %v177_v48 = vcombine.low %v170_v34, %v174_v35  ;;  %1855 = vmatprep.subr.mxu0 %v2026_v30  ;;  %1857 = vmatprep.mubr.msk.f32.mxu0 %vm2027_vm1, %v2026_v30 }
   0xd   :  { %v99_v38 = vmul.f32 %v2077_v5, %v97_v32  ;;  %v100_v39 = vmul.f32 %v2082_v7, %v97_v32  ;;  %v139_v40 = vmul.f32 %v2077_v5, %v137_v33  ;;  %v140_v44 = vmul.f32 %v2082_v7, %v137_v33  ;;  %1856 = vmatpush3.msk.msra.mxu0 %vm66_vm0, %v197_v29  ;;  %v198_v32 = vld [vmem:[%s2437_s2 + $0x4] sm:$0xf] }
   0xe   :  { %v62_v41 = vcombine.high %v58_v36, %v58_v36  ;;  %v67_v42 = vsel %vm66_vm0, %v58_v36, 0.0  ;;  %v63_v43 = vcombine.high %v59_v37, %v59_v37  ;;  %v72_v50 = vsel %vm66_vm0, %v59_v37, 0.0  ;;  %1860 = vmatprep.subr.mxu1 %v2026_v30  ;;  %1862 = vmatprep.mubr.msk.f32.mxu1 %vm2027_vm1, %v2026_v30 }
   0xf   :  { %v103_v45 = vcombine.high %v99_v38, %v99_v38  ;;  %v107_v46 = vsel %vm66_vm0, %v99_v38, 0.0  ;;  %v104_v47 = vcombine.high %v100_v39, %v100_v39  ;;  %v143_v52 = vcombine.high %v139_v40, %v139_v40  ;;  %1865 = vmatprep.subr.mxu0 %v2026_v30  ;;  %1861 = vmatpush3.msk.msra.mxu1 %vm66_vm0, %v198_v32 }
  0x10   :  { %v68_v49 = vsel %vm66_vm0, %v62_v41, 0.0  ;;  %v73_v51 = vsel %vm66_vm0, %v63_v43, 0.0  ;;  %v112_v55 = vsel %vm66_vm0, %v100_v39, 0.0  ;;  %v144_v58 = vcombine.high %v140_v44, %v140_v44  ;;  %1870 = vmatprep.subr.mxu1 %v2026_v30  ;;  %v199_v41 = vld [vmem:[%s2437_s2 + $0x8] sm:$0xf] }
  0x11   :  { %v69_v53 = vadd.f32 %v68_v49, %v67_v42  ;;  %v108_v54 = vsel %vm66_vm0, %v103_v45, 0.0  ;;  %v113_v56 = vsel %vm66_vm0, %v104_v47, 0.0  ;;  %v74_v59 = vadd.f32 %v73_v51, %v72_v50  ;;  %v200_v47 = vld [vmem:[%s2437_s2 + $0xc] sm:$0xf] }
  0x12   :  { %v109_v57 = vadd.f32 %v108_v54, %v107_v46  ;;  %v179_v60 = vmul.f32 %v2077_v5, %v177_v48  ;;  %v180_v61 = vmul.f32 %v2082_v7, %v177_v48  ;;  %v114_v62 = vadd.f32 %v113_v56, %v112_v55 }
  0x13   :  { %70 = vadd.xlane.f32.xlu0 %v69_v53  ;;  %v147_v63 = vsel %vm66_vm0, %v139_v40, 0.0  ;;  %v148_v0 = vsel %vm66_vm0, %v143_v52, 0.0  ;;  %v152_v1 = vsel %vm66_vm0, %v140_v44, 0.0  ;;  %v153_v2 = vsel %vm66_vm0, %v144_v58, 0.0 }
  0x14   :  { %110 = vadd.xlane.f32.xlu1 %v109_v57  ;;  %v183_v3 = vcombine.high %v179_v60, %v179_v60  ;;  %v184_v4 = vcombine.high %v180_v61, %v180_v61  ;;  %v149_v6 = vadd.f32 %v148_v0, %v147_v63  ;;  %v154_v9 = vadd.f32 %v153_v2, %v152_v1  ;;  %v607_v2 = vld [vmem:[%s2439_s4 + $0x8] sm:$0xf] }
  0x15   :  { %v187_v12 = vsel %vm66_vm0, %v179_v60, 0.0  ;;  %v192_v14 = vsel %vm66_vm0, %v180_v61, 0.0  ;;  %v606_v60 = vld [vmem:[%s2439_s4 + $0x4] sm:$0xf]  ;;  %v1794_v61 = vld [vmem:[%s2438_s3] ss:$0 sm:$0xff] }
  0x16   :  { %v188_v13 = vsel %vm66_vm0, %v183_v3, 0.0  ;;  %v193_v15 = vsel %vm66_vm0, %v184_v4, 0.0  ;;  %v1795_v3 = vld [vmem:[%s2438_s3 + $0x1] ss:$0 sm:$0xff] }
  0x17   :  { %75 = vadd.xlane.f32.xlu0 %v74_v59  ;;  %v189_v19 = vadd.f32 %v188_v13, %v187_v12  ;;  %v194_v24 = vadd.f32 %v193_v15, %v192_v14  ;;  %v605_v59 = vld [vmem:[%s2439_s4] sm:$0xf]  ;;  %v608_v13 = vld [vmem:[%s2439_s4 + $0xc] sm:$0xf] }
  0x18   :  { %115 = vadd.xlane.f32.xlu1 %v114_v62  ;;  %v1796_v14 = vld [vmem:[%s2438_s3 + $0x2] ss:$0 sm:$0xff] }
  0x1b   :  { %150 = vadd.xlane.f32.xlu0 %v149_v6 }
  0x1c   :  { %155 = vadd.xlane.f32.xlu1 %v154_v9 }
  0x1f   :  { %190 = vadd.xlane.f32.xlu0 %v189_v19 }
  0x20   :  { %195 = vadd.xlane.f32.xlu1 %v194_v24 }
  0xa0   :  { %v71_v25 = vpop.xlane.xlu0 %70 }
  0xa1   :  { %232 = vperm.xlu0 %1919, %v71_v25   ;;  %v111_v28 = vpop.xlane.xlu1 %110 }
  0xa4   :  { %v76_v26 = vpop.xlane.xlu0 %75 }
  0xa5   :  { %235 = vperm.xlu1 %1920, %v76_v26   ;;  %v116_v31 = vpop.xlane.xlu1 %115  ;;  %v1797_v26 = vld [vmem:[%s2438_s3 + $0x3] ss:$0 sm:$0xff] }
  0xa8   :  { %v151_v33 = vpop.xlane.xlu0 %150 }
  0xa9   :  { %328 = vperm.xlu1 %1920, %v111_v28   ;;  %v156_v34 = vpop.xlane.xlu1 %155 }
  0xac   :  { %v191_v35 = vpop.xlane.xlu0 %190 }
  0xad   :  { %331 = vperm.xlu1 %1920, %v116_v31   ;;  %v196_v36 = vpop.xlane.xlu1 %195 }
  0xb1   :  { %420 = vperm.xlu1 %1920, %v151_v33   ;;  %v1806_v33 = vld [vmem:[%s2440_s5] ss:$0 sm:$0xff] }
  0xb5   :  { %423 = vperm.xlu1 %1920, %v156_v34  }
  0xb9   :  { %512 = vperm.xlu1 %1920, %v191_v35  }
  0xbd   :  { %515 = vperm.xlu1 %1920, %v196_v36  }
 0x120   :  { %v233_v37 = vpop.permute.xlu0 %232 }
 0x121   :  { %v242_v39 = vrot.slane %v233_v37, %v2086_v10 }
 0x124   :  { %v236_v38 = vpop.permute.xlu1 %235 }
 0x125   :  { %v246_v40 = vrot.slane %v236_v38, %v2086_v10 }
 0x127   :  { %v248_v42 = vsel %vm247_vm2, %v246_v40, %v242_v39  ;;  %v1807_v39 = vld [vmem:[%s2440_s5 + $0x1] ss:$0 sm:$0xff] }
 0x128   :  { %v329_v43 = vpop.permute.xlu1 %328  ;;  %1858 = vmatmul.mubr.msk.f32.vlgmr.msra.gmra.mrb[0].mxu0 %vm249_vm3, %v248_v42 }
 0x129   :  { %1866 = vmatpush3.msk.msra.mxu0 %vm66_vm0, %v199_v41  ;;  %1867 = vmatprep.mubr.msk.f32.mxu0 %vm2027_vm1, %v2026_v30  ;;  %v336_v45 = vrot.slane %v329_v43, %v2086_v10 }
 0x12a   :  { %1875 = vmatprep.subr.mxu0 %v2026_v30 }
 0x12c   :  { %v332_v44 = vpop.permute.xlu1 %331 }
 0x12d   :  { %v340_v46 = vrot.slane %v332_v44, %v2086_v10 }
 0x12f   :  { %v341_v48 = vsel %vm247_vm2, %v340_v46, %v336_v45  ;;  %v1808_v45 = vld [vmem:[%s2440_s5 + $0x2] ss:$0 sm:$0xff] }
 0x130   :  { %1863 = vmatmul.mubr.msk.f32.vlgmr.msra.gmra.mrb[0].mxu1 %vm249_vm3, %v341_v48  ;;  %v421_v49 = vpop.permute.xlu1 %420 }
 0x131   :  { %1871 = vmatpush3.msk.msra.mxu1 %vm66_vm0, %v200_v47  ;;  %1872 = vmatprep.mubr.msk.f32.mxu1 %vm2027_vm1, %v2026_v30  ;;  %v428_v51 = vrot.slane %v421_v49, %v2086_v10 }
 0x132   :  { %1880 = vmatprep.subr.mxu1 %v2026_v30 }
 0x134   :  { %v424_v50 = vpop.permute.xlu1 %423 }
 0x135   :  { %v432_v52 = vrot.slane %v424_v50, %v2086_v10 }
 0x137   :  { %v433_v53 = vsel %vm247_vm2, %v432_v52, %v428_v51 }
 0x138   :  { %v513_v54 = vpop.permute.xlu1 %512  ;;  %1868 = vmatmul.mubr.msk.f32.vlgmr.msra.gmra.mrb[2].mxu0 %vm249_vm3, %v433_v53  ;;  %v1809_v53 = vld [vmem:[%s2440_s5 + $0x3] ss:$0 sm:$0xff] }
 0x139   :  { %1877 = vmatprep.mubr.msk.f32.mxu0 %vm2027_vm1, %v2026_v30  ;;  %v520_v56 = vrot.slane %v513_v54, %v2086_v10  ;;  %1876 = vmatpush3.msk.msra.mxu0 %vm66_vm0, %v605_v59 }
 0x13a   :  { %1885 = vmatprep.subr.mxu0 %v2026_v30 }
 0x13c   :  { %v516_v55 = vpop.permute.xlu1 %515 }
 0x13d   :  { %v524_v57 = vrot.slane %v516_v55, %v2086_v10 }
 0x13f   :  { %v525_v58 = vsel %vm247_vm2, %v524_v57, %v520_v56 }
 0x140   :  { %1873 = vmatmul.mubr.msk.f32.vlgmr.msra.gmra.mrb[2].mxu1 %vm249_vm3, %v525_v58 }
 0x141   :  { %1882 = vmatprep.mubr.msk.f32.mxu1 %vm2027_vm1, %v2026_v30  ;;  %1881 = vmatpush3.msk.msra.mxu1 %vm66_vm0, %v606_v60 }
 0x142   :  { %1890 = vmatprep.subr.mxu1 %v2026_v30 }
 0x1fb   :  { %v321_v62 = vpop.f32.mrb[0].mxu0 }
 0x1fc   :  { %v322_v63 = vadd.f32 %v1794_v61, %v321_v62  ;;  %v1859_v0 = vpop.f32.mrb[1].mxu0 }
 0x1fe   :  { %v601_v1 = vmax.f32 %v322_v63, 0.0 }
 0x200   :  { %1878 = vmatmul.mubr.msk.f32.vlgmr.msra.gmra.mrb[4].mxu0 %vm249_vm3, %v601_v1 }
 0x201   :  { %1886 = vmatpush3.msk.msra.mxu0 %vm66_vm0, %v607_v2  ;;  %1887 = vmatprep.mubr.msk.f32.mxu0 %vm2027_vm1, %v2026_v30 }
 0x202   :  { %1895 = vmatprep.subr.mxu0 %v2026_v30 }
 0x203   :  { %v413_v4 = vpop.f32.mrb[0].mxu1 }
 0x204   :  { %v414_v6 = vadd.f32 %v1795_v3, %v413_v4  ;;  %v1864_v9 = vpop.f32.mrb[1].mxu1 }
 0x206   :  { %v602_v12 = vmax.f32 %v414_v6, 0.0 }
 0x208   :  { %1883 = vmatmul.mubr.msk.f32.vlgmr.msra.gmra.mrb[4].mxu1 %vm249_vm3, %v602_v12 }
 0x209   :  { %1891 = vmatpush3.msk.msra.mxu1 %vm66_vm0, %v608_v13  ;;  %1892 = vmatprep.mubr.msk.f32.mxu1 %vm2027_vm1, %v2026_v30 }
 0x20a   :  { %1900 = vmatprep.subr.mxu1 %v2026_v30 }
 0x20b   :  { %v505_v15 = vpop.f32.mrb[2].mxu0 }
 0x20c   :  { %v506_v19 = vadd.f32 %v1796_v14, %v505_v15  ;;  %v1869_v24 = vpop.f32.mrb[3].mxu0 }
 0x20e   :  { %v603_v25 = vmax.f32 %v506_v19, 0.0 }
 0x210   :  { %1888 = vmatmul.mubr.msk.f32.vlgmr.msra.gmra.mrb[6].mxu0 %vm249_vm3, %v603_v25  ;;  %v2276_v25 = vcombine.high %v2082_v7, %v2082_v7 }
 0x211   :  { %1897 = vmatprep.mubr.msk.f32.mxu0 %vm2027_vm1, %v2026_v30 }
 0x213   :  { %v597_v28 = vpop.f32.mrb[2].mxu1 }
 0x214   :  { %v598_v29 = vadd.f32 %v1797_v26, %v597_v28  ;;  %v1874_v31 = vpop.f32.mrb[3].mxu1  ;;  %v2280_v26 = vcombine.high %v2077_v5, %v2077_v5 }
 0x216   :  { %v604_v32 = vmax.f32 %v598_v29, 0.0 }
 0x218   :  { %1893 = vmatmul.mubr.msk.f32.vlgmr.msra.gmra.mrb[6].mxu1 %vm249_vm3, %v604_v32 }
 0x219   :  { %1902 = vmatprep.mubr.msk.f32.mxu1 %vm2027_vm1, %v2026_v30 }
 0x2d3   :  { %v709_v34 = vpop.f32.mrb[4].mxu0 }
 0x2d4   :  { %v710_v35 = vadd.f32 %v1806_v33, %v709_v34  ;;  %v1879_v36 = vpop.f32.mrb[5].mxu0 }
 0x2d6   :  { %v941_v37 = vsub.f32 0.0, %v710_v35 }
 0x2d8   :  { %v945_v38 = vmul.f32 1.442695, %v941_v37 }
 0x2da   :  { %1921 = vpow2.f32 %v945_v38 }
 0x2db   :  { %v785_v40 = vpop.f32.mrb[4].mxu1 }
 0x2dc   :  { %v786_v41 = vadd.f32 %v1807_v39, %v785_v40  ;;  %v1884_v42 = vpop.f32.mrb[5].mxu1 }
 0x2de   :  { %v942_v43 = vsub.f32 0.0, %v786_v41 }
 0x2e0   :  { %v947_v44 = vmul.f32 1.442695, %v942_v43 }
 0x2e2   :  { %1923 = vpow2.f32 %v947_v44 }
 0x2e3   :  { %v861_v46 = vpop.f32.mrb[6].mxu0 }
 0x2e4   :  { %v1922_v47 = vpop.eup %1921  ;;  %v862_v48 = vadd.f32 %v1808_v45, %v861_v46  ;;  %v1889_v49 = vpop.f32.mrb[7].mxu0 }
 0x2e5   :  { %v953_v50 = vadd.f32 1.0, %v1922_v47 }
 0x2e6   :  { %v943_v51 = vsub.f32 0.0, %v862_v48 }
 0x2e7   :  { %1925 = vrcp.f32 %v953_v50 }
 0x2e8   :  { %v949_v52 = vmul.f32 1.442695, %v943_v51 }
 0x2ea   :  { %1927 = vpow2.f32 %v949_v52 }
 0x2eb   :  { %v937_v54 = vpop.f32.mrb[6].mxu1 }
 0x2ec   :  { %v1924_v55 = vpop.eup %1923  ;;  %v938_v56 = vadd.f32 %v1809_v53, %v937_v54  ;;  %v1894_v57 = vpop.f32.mrb[7].mxu1 }
 0x2ed   :  { %v954_v58 = vadd.f32 1.0, %v1924_v55 }
 0x2ee   :  { %v944_v59 = vsub.f32 0.0, %v938_v56 }
 0x2ef   :  { %1929 = vrcp.f32 %v954_v58 }
 0x2f0   :  { %v951_v60 = vmul.f32 1.442695, %v944_v59 }
 0x2f1   :  { %v2250_v61 = vpop.eup %1925 }
 0x2f2   :  { %1931 = vpow2.f32 %v951_v60  ;;  %v975_v62 = vrot.slane %v2250_v61, %v2088_v11  ;;  %v968_v63 = vrot.slane %v2250_v61, %v2084_v8 }
 0x2f4   :  { %v1928_v0 = vpop.eup %1927  ;;  %977 = vbcast.lane.b32.xlu0 %v975_v62, 256  ;;  %970 = vbcast.lane.b32.xlu1 %v968_v63, 256 }
 0x2f5   :  { %v955_v1 = vadd.f32 1.0, %v1928_v0 }
 0x2f7   :  { %1933 = vrcp.f32 %v955_v1 }
 0x2f9   :  { %v2256_v2 = vpop.eup %1929 }
 0x2fa   :  { %v1102_v3 = vrot.slane %v2256_v2, %v2088_v11  ;;  %v1095_v4 = vrot.slane %v2256_v2, %v2084_v8 }
 0x2fc   :  { %v1932_v6 = vpop.eup %1931  ;;  %1104 = vbcast.lane.b32.xlu0 %v1102_v3, 256  ;;  %1097 = vbcast.lane.b32.xlu1 %v1095_v4, 256 }
 0x2fd   :  { %v956_v9 = vadd.f32 1.0, %v1932_v6 }
 0x2ff   :  { %1935 = vrcp.f32 %v956_v9 }
 0x301   :  { %v2262_v12 = vpop.eup %1933 }
 0x302   :  { %v1223_v13 = vrot.slane %v2262_v12, %v2088_v11  ;;  %v1216_v14 = vrot.slane %v2262_v12, %v2084_v8 }
 0x304   :  { %1225 = vbcast.lane.b32.xlu0 %v1223_v13, 256  ;;  %1218 = vbcast.lane.b32.xlu1 %v1216_v14, 256 }
 0x309   :  { %v2268_v15 = vpop.eup %1935 }
 0x30a   :  { %v1344_v19 = vrot.slane %v2268_v15, %v2088_v11  ;;  %v1337_v24 = vrot.slane %v2268_v15, %v2084_v8 }
 0x30c   :  { %1346 = vbcast.lane.b32.xlu0 %v1344_v19, 256  ;;  %1339 = vbcast.lane.b32.xlu1 %v1337_v24, 256 }
 0x366   :  { %v978_v28 = vpop.permute.xlu0 %977  ;;  %v971_v29 = vpop.permute.xlu1 %970 }
 0x367   :  { %v987_v31 = vmul.f32 %v2082_v7, %v978_v28  ;;  %v988_v32 = vmul.f32 %v2276_v25, %v978_v28  ;;  %v985_v11 = vmul.f32 %v2077_v5, %v971_v29  ;;  %v986_v33 = vmul.f32 %v2280_v26, %v971_v29 }
 0x369   :  { %v1003_v34 = vsel %vm66_vm0, %v987_v31, 0.0  ;;  %v1010_v35 = vsel %vm66_vm0, %v988_v32, 0.0  ;;  %v989_v36 = vsel %vm66_vm0, %v985_v11, 0.0  ;;  %v996_v37 = vsel %vm66_vm0, %v986_v33, 0.0 }
 0x36a   :  { %v1004_v38 = vrot.slane %v1003_v34, 4  ;;  %v1011_v39 = vrot.slane %v1010_v35, 4  ;;  %v990_v40 = vrot.slane %v989_v36, 4  ;;  %v997_v41 = vrot.slane %v996_v37, 4 }
 0x36c   :  { %v1005_v42 = vadd.f32 %v1004_v38, %v1003_v34  ;;  %v1012_v43 = vadd.f32 %v1011_v39, %v1010_v35  ;;  %v991_v44 = vadd.f32 %v990_v40, %v989_v36  ;;  %v998_v45 = vadd.f32 %v997_v41, %v996_v37 }
 0x36e   :  { %v1006_v46 = vrot.slane %v1005_v42, 2  ;;  %v1013_v47 = vrot.slane %v1012_v43, 2  ;;  %v992_v48 = vrot.slane %v991_v44, 2  ;;  %v999_v49 = vrot.slane %v998_v45, 2  ;;  %v1105_v50 = vpop.permute.xlu0 %1104  ;;  %v1098_v51 = vpop.permute.xlu1 %1097 }
 0x36f   :  { %v1108_v52 = vmul.f32 %v2082_v7, %v1105_v50  ;;  %v1109_v53 = vmul.f32 %v1105_v50, %v2276_v25  ;;  %v1106_v54 = vmul.f32 %v2077_v5, %v1098_v51  ;;  %v1107_v55 = vmul.f32 %v1098_v51, %v2280_v26 }
 0x370   :  { %v1007_v56 = vadd.f32 %v1006_v46, %v1005_v42  ;;  %v1014_v57 = vadd.f32 %v1013_v47, %v1012_v43  ;;  %v993_v58 = vadd.f32 %v992_v48, %v991_v44  ;;  %v1000_v59 = vadd.f32 %v999_v49, %v998_v45 }
 0x371   :  { %v1124_v60 = vsel %vm66_vm0, %v1108_v52, 0.0  ;;  %v1131_v62 = vsel %vm66_vm0, %v1109_v53, 0.0  ;;  %v1110_v63 = vsel %vm66_vm0, %v1106_v54, 0.0  ;;  %v1117_v0 = vsel %vm66_vm0, %v1107_v55, 0.0 }
 0x372   :  { %v1008_v1 = vrot.slane %v1007_v56, 1  ;;  %v1015_v3 = vrot.slane %v1014_v57, 1  ;;  %v994_v4 = vrot.slane %v993_v58, 1  ;;  %v1001_v6 = vrot.slane %v1000_v59, 1 }
 0x373   :  { %v1125_v9 = vrot.slane %v1124_v60, 4  ;;  %v1132_v13 = vrot.slane %v1131_v62, 4  ;;  %v1111_v14 = vrot.slane %v1110_v63, 4  ;;  %v1118_v19 = vrot.slane %v1117_v0, 4 }
 0x374   :  { %v1009_v24 = vadd.f32 %v1008_v1, %v1007_v56  ;;  %v1016_v28 = vadd.f32 %v1015_v3, %v1014_v57  ;;  %v995_v29 = vadd.f32 %v994_v4, %v993_v58  ;;  %v1002_v31 = vadd.f32 %v1001_v6, %v1000_v59 }
 0x375   :  { %v1126_v32 = vadd.f32 %v1125_v9, %v1124_v60  ;;  %v1133_v11 = vadd.f32 %v1132_v13, %v1131_v62  ;;  %v1112_v33 = vadd.f32 %v1111_v14, %v1110_v63  ;;  %v1119_v34 = vadd.f32 %v1118_v19, %v1117_v0 }
 0x376   :  { %v1019_v35 = vmul.f32 0.25, %v1009_v24  ;;  %v1020_v36 = vmul.f32 0.25, %v1016_v28  ;;  %v1017_v37 = vmul.f32 0.25, %v995_v29  ;;  %v1018_v38 = vmul.f32 0.25, %v1002_v31  ;;  %v1226_v43 = vpop.permute.xlu0 %1225  ;;  %v1219_v4 = vpop.permute.xlu1 %1218 }
 0x377   :  { %v1127_v39 = vrot.slane %v1126_v32, 2  ;;  %v1134_v40 = vrot.slane %v1133_v11, 2  ;;  %v1113_v41 = vrot.slane %v1112_v33, 2  ;;  %v1120_v42 = vrot.slane %v1119_v34, 2 }
 0x378   :  { %v1023_v44 = vsub.f32 0.0, %v1019_v35  ;;  %v1024_v45 = vsub.f32 0.0, %v1020_v36  ;;  %v1021_v46 = vsub.f32 0.0, %v1017_v37  ;;  %v1022_v47 = vsub.f32 0.0, %v1018_v38 }
 0x379   :  { %v1128_v48 = vadd.f32 %v1127_v39, %v1126_v32  ;;  %v1135_v49 = vadd.f32 %v1134_v40, %v1133_v11  ;;  %v1114_v50 = vadd.f32 %v1113_v41, %v1112_v33  ;;  %v1121_v51 = vadd.f32 %v1120_v42, %v1119_v34 }
 0x37a   :  { %v1029_v52 = vmul.f32 1.442695, %v1023_v44  ;;  %v1031_v53 = vmul.f32 1.442695, %v1024_v45  ;;  %v1025_v54 = vmul.f32 1.442695, %v1021_v46  ;;  %v1229_v55 = vmul.f32 %v2082_v7, %v1226_v43 }
 0x37b   :  { %v1027_v56 = vmul.f32 1.442695, %v1022_v47  ;;  %v1129_v57 = vrot.slane %v1128_v48, 1  ;;  %v1136_v58 = vrot.slane %v1135_v49, 1  ;;  %v1115_v59 = vrot.slane %v1114_v50, 1 }
 0x37c   :  { %1937 = vpow2.f32 %v1029_v52  ;;  %v1122_v60 = vrot.slane %v1121_v51, 1  ;;  %v1230_v62 = vmul.f32 %v1226_v43, %v2276_v25  ;;  %v1245_v63 = vsel %vm66_vm0, %v1229_v55, 0.0 }
 0x37d   :  { %1939 = vpow2.f32 %v1031_v53  ;;  %v1130_v0 = vadd.f32 %v1129_v57, %v1128_v48  ;;  %v1137_v1 = vadd.f32 %v1136_v58, %v1135_v49  ;;  %v1116_v3 = vadd.f32 %v1115_v59, %v1114_v50 }
 0x37e   :  { %1941 = vpow2.f32 %v1025_v54  ;;  %v1123_v6 = vadd.f32 %v1122_v60, %v1121_v51  ;;  %v1246_v9 = vrot.slane %v1245_v63, 4  ;;  %v1252_v13 = vsel %vm66_vm0, %v1230_v62, 0.0  ;;  %v1347_v11 = vpop.permute.xlu0 %1346 }
 0x37f   :  { %1943 = vpow2.f32 %v1027_v56  ;;  %v1140_v14 = vmul.f32 0.25, %v1130_v0  ;;  %v1141_v19 = vmul.f32 0.25, %v1137_v1  ;;  %v1138_v24 = vmul.f32 0.25, %v1116_v3 }
 0x380   :  { %v1139_v28 = vmul.f32 0.25, %v1123_v6  ;;  %v1247_v29 = vadd.f32 %v1246_v9, %v1245_v63  ;;  %v1253_v31 = vrot.slane %v1252_v13, 4  ;;  %v1227_v32 = vmul.f32 %v2077_v5, %v1219_v4 }
 0x381   :  { %v1144_v33 = vsub.f32 0.0, %v1140_v14  ;;  %v1145_v34 = vsub.f32 0.0, %v1141_v19  ;;  %v1142_v35 = vsub.f32 0.0, %v1138_v24  ;;  %v1228_v36 = vmul.f32 %v1219_v4, %v2280_v26 }
 0x382   :  { %v1143_v37 = vsub.f32 0.0, %v1139_v28  ;;  %v1248_v38 = vrot.slane %v1247_v29, 2  ;;  %v1254_v39 = vadd.f32 %v1253_v31, %v1252_v13  ;;  %v1231_v40 = vsel %vm66_vm0, %v1227_v32, 0.0 }
 0x383   :  { %v1150_v41 = vmul.f32 1.442695, %v1144_v33  ;;  %v1152_v42 = vmul.f32 1.442695, %v1145_v34  ;;  %v1146_v43 = vmul.f32 1.442695, %v1142_v35  ;;  %v1350_v44 = vmul.f32 %v2082_v7, %v1347_v11 }
 0x384   :  { %v1148_v45 = vmul.f32 1.442695, %v1143_v37  ;;  %v1249_v46 = vadd.f32 %v1248_v38, %v1247_v29  ;;  %v1255_v47 = vrot.slane %v1254_v39, 2  ;;  %v1232_v48 = vrot.slane %v1231_v40, 4  ;;  %v1340_v29 = vpop.permute.xlu1 %1339 }
 0x385   :  { %1945 = vpow2.f32 %v1150_v41  ;;  %v1238_v49 = vsel %vm66_vm0, %v1228_v36, 0.0  ;;  %v1351_v50 = vmul.f32 %v1347_v11, %v2276_v25  ;;  %v1366_v51 = vsel %vm66_vm0, %v1350_v44, 0.0 }
 0x386   :  { %v1938_v52 = vpop.eup %1937  ;;  %1947 = vpow2.f32 %v1152_v42  ;;  %v1250_v53 = vrot.slane %v1249_v46, 1  ;;  %v1256_v54 = vadd.f32 %v1255_v47, %v1254_v39  ;;  %v1233_v55 = vadd.f32 %v1232_v48, %v1231_v40 }
 0x387   :  { %v1940_v56 = vpop.eup %1939  ;;  %v1035_v57 = vadd.f32 1.0, %v1938_v52  ;;  %1949 = vpow2.f32 %v1146_v43  ;;  %v1239_v58 = vrot.slane %v1238_v49, 4  ;;  %v1367_v59 = vrot.slane %v1366_v51, 4 }
 0x388   :  { %v1942_v60 = vpop.eup %1941  ;;  %v1036_v62 = vadd.f32 1.0, %v1940_v56  ;;  %1951 = vpow2.f32 %v1148_v45  ;;  %v1251_v63 = vadd.f32 %v1250_v53, %v1249_v46  ;;  %v1257_v0 = vrot.slane %v1256_v54, 1 }
 0x389   :  { %v1944_v1 = vpop.eup %1943  ;;  %1953 = vrcp.f32 %v1035_v57  ;;  %v1033_v3 = vadd.f32 1.0, %v1942_v60  ;;  %v1234_v4 = vrot.slane %v1233_v55, 2  ;;  %v1240_v6 = vadd.f32 %v1239_v58, %v1238_v49 }
 0x38a   :  { %1955 = vrcp.f32 %v1036_v62  ;;  %v1034_v9 = vadd.f32 1.0, %v1944_v1  ;;  %v1258_v13 = vadd.f32 %v1257_v0, %v1256_v54  ;;  %v1261_v14 = vmul.f32 0.25, %v1251_v63 }
 0x38b   :  { %1957 = vrcp.f32 %v1033_v3  ;;  %v1235_v19 = vadd.f32 %v1234_v4, %v1233_v55  ;;  %v1241_v24 = vrot.slane %v1240_v6, 2  ;;  %v1368_v28 = vadd.f32 %v1367_v59, %v1366_v51 }
 0x38c   :  { %1959 = vrcp.f32 %v1034_v9  ;;  %v1262_v31 = vmul.f32 0.25, %v1258_v13  ;;  %v1265_v32 = vsub.f32 0.0, %v1261_v14  ;;  %v1373_v11 = vsel %vm66_vm0, %v1351_v50, 0.0 }
 0x38d   :  { %v1236_v33 = vrot.slane %v1235_v19, 1  ;;  %v1242_v34 = vadd.f32 %v1241_v24, %v1240_v6  ;;  %v1369_v35 = vrot.slane %v1368_v28, 2  ;;  %v1374_v36 = vrot.slane %v1373_v11, 4 }
 0x38e   :  { %v1266_v37 = vsub.f32 0.0, %v1262_v31  ;;  %v1271_v38 = vmul.f32 1.442695, %v1265_v32  ;;  %v1348_v39 = vmul.f32 %v2077_v5, %v1340_v29  ;;  %v1349_v40 = vmul.f32 %v1340_v29, %v2280_v26 }
 0x38f   :  { %v1946_v41 = vpop.eup %1945  ;;  %v1237_v42 = vadd.f32 %v1236_v33, %v1235_v19  ;;  %v1243_v43 = vrot.slane %v1242_v34, 1  ;;  %v1370_v44 = vadd.f32 %v1369_v35, %v1368_v28  ;;  %v1375_v45 = vadd.f32 %v1374_v36, %v1373_v11 }
 0x390   :  { %v1948_v46 = vpop.eup %1947  ;;  %v1156_v47 = vadd.f32 1.0, %v1946_v41  ;;  %1961 = vpow2.f32 %v1271_v38  ;;  %v1273_v48 = vmul.f32 1.442695, %v1266_v37  ;;  %v1352_v49 = vsel %vm66_vm0, %v1348_v39, 0.0 }
 0x391   :  { %v1950_v50 = vpop.eup %1949  ;;  %v1157_v51 = vadd.f32 1.0, %v1948_v46  ;;  %v1244_v52 = vadd.f32 %v1243_v43, %v1242_v34  ;;  %v1259_v53 = vmul.f32 0.25, %v1237_v42  ;;  %v1371_v54 = vrot.slane %v1370_v44, 1 }
 0x392   :  { %v1952_v55 = vpop.eup %1951  ;;  %1963 = vrcp.f32 %v1156_v47  ;;  %v1154_v56 = vadd.f32 1.0, %v1950_v50  ;;  %v1376_v57 = vrot.slane %v1375_v45, 2  ;;  %v1353_v58 = vrot.slane %v1352_v49, 4 }
 0x393   :  { %v1954_v59 = vpop.eup %1953  ;;  %1965 = vrcp.f32 %v1157_v51  ;;  %v1155_v60 = vadd.f32 1.0, %v1952_v55  ;;  %v1260_v62 = vmul.f32 0.25, %v1244_v52  ;;  %v1263_v63 = vsub.f32 0.0, %v1259_v53 }
 0x394   :  { %v1956_v0 = vpop.eup %1955  ;;  %1967 = vrcp.f32 %v1154_v56  ;;  %v1372_v1 = vadd.f32 %v1371_v54, %v1370_v44  ;;  %v1377_v3 = vadd.f32 %v1376_v57, %v1375_v45  ;;  %v1354_v4 = vadd.f32 %v1353_v58, %v1352_v49 }
 0x395   :  { %v1958_v6 = vpop.eup %1957  ;;  %1969 = vrcp.f32 %v1155_v60  ;;  %v1264_v9 = vsub.f32 0.0, %v1260_v62  ;;  %v1267_v13 = vmul.f32 1.442695, %v1263_v63  ;;  %v1359_v14 = vsel %vm66_vm0, %v1349_v40, 0.0 }
 0x396   :  { %v1960_v19 = vpop.eup %1959  ;;  %1971 = vpow2.f32 %v1273_v48  ;;  %v1378_v24 = vrot.slane %v1377_v3, 1  ;;  %v1382_v28 = vmul.f32 0.25, %v1372_v1  ;;  %v1355_v29 = vrot.slane %v1354_v4, 2 }
 0x397   :  { %1973 = vpow2.f32 %v1267_v13  ;;  %v1269_v31 = vmul.f32 1.442695, %v1264_v9  ;;  %v1360_v32 = vrot.slane %v1359_v14, 4  ;;  %v1047_v11 = vmul.f32 %v1954_v59, %v2091_v16 }
 0x398   :  { %v1379_v33 = vadd.f32 %v1378_v24, %v1377_v3  ;;  %v1386_v34 = vsub.f32 0.0, %v1382_v28  ;;  %v1356_v35 = vadd.f32 %v1355_v29, %v1354_v4  ;;  %v1048_v36 = vmul.f32 %v1956_v0, %v2093_v17 }
 0x399   :  { %1975 = vpow2.f32 %v1269_v31  ;;  %v1361_v37 = vadd.f32 %v1360_v32, %v1359_v14  ;;  %v1060_v38 = vrot.slane %v1047_v11, %v2084_v8  ;;  %v1045_v39 = vmul.f32 %v1958_v6, %v2091_v16 }
 0x39a   :  { %v1962_v40 = vpop.eup %1961  ;;  %v1383_v41 = vmul.f32 0.25, %v1379_v33  ;;  %v1392_v42 = vmul.f32 1.442695, %v1386_v34  ;;  %v1357_v43 = vrot.slane %v1356_v35, 1  ;;  %v1064_v44 = vrot.slane %v1048_v36, %v2084_v8 }
 0x39b   :  { %v1277_v45 = vadd.f32 1.0, %v1962_v40  ;;  %v1362_v46 = vrot.slane %v1361_v37, 2  ;;  %v1067_v47 = vmul.f32 %v2082_v7, %v1060_v38  ;;  %v1046_v48 = vmul.f32 %v1960_v19, %v2093_v17 }
 0x39c   :  { %v1964_v49 = vpop.eup %1963  ;;  %v1387_v50 = vsub.f32 0.0, %v1383_v41  ;;  %1977 = vpow2.f32 %v1392_v42  ;;  %v1358_v51 = vadd.f32 %v1357_v43, %v1356_v35  ;;  %v1068_v52 = vmul.f32 %v1064_v44, %v2276_v25 }
 0x39d   :  { %v1966_v53 = vpop.eup %1965  ;;  %1979 = vrcp.f32 %v1277_v45  ;;  %v1363_v16 = vadd.f32 %v1362_v46, %v1361_v37  ;;  %v1074_v54 = vsel %vm66_vm0, %v1067_v47, 0.0  ;;  %v1052_v55 = vrot.slane %v1045_v39, %v2084_v8 }
 0x39e   :  { %v1968_v56 = vpop.eup %1967  ;;  %v1394_v57 = vmul.f32 1.442695, %v1387_v50  ;;  %v1380_v58 = vmul.f32 0.25, %v1358_v51  ;;  %v1075_v59 = vsel %vm66_vm0, %v1068_v52, 0.0  ;;  %v1056_v17 = vrot.slane %v1046_v48, %v2084_v8 }
 0x39f   :  { %v1970_v60 = vpop.eup %1969  ;;  %v1364_v62 = vrot.slane %v1363_v16, 1  ;;  %v1076_v63 = vadd.f32 %v1075_v59, %v1074_v54  ;;  %v1065_v0 = vmul.f32 %v2077_v5, %v1052_v55  ;;  %v1166_v1 = vmul.f32 %v1968_v56, %v2096_v18 }
 0x3a0   :  { %v1972_v3 = vpop.eup %1971  ;;  %1981 = vpow2.f32 %v1394_v57  ;;  %v1384_v4 = vsub.f32 0.0, %v1380_v58  ;;  %v1066_v6 = vmul.f32 %v1056_v17, %v2280_v26  ;;  %v1167_v9 = vmul.f32 %v1970_v60, %v2098_v20 }
 0x3a1   :  { %v1974_v13 = vpop.eup %1973  ;;  %v1278_v14 = vadd.f32 1.0, %v1972_v3  ;;  %v1365_v19 = vadd.f32 %v1364_v62, %v1363_v16  ;;  %1077 = vadd.xlane.f32.xlu0 %v1076_v63  ;;  %v1069_v24 = vsel %vm66_vm0, %v1065_v0, 0.0  ;;  %v1173_v28 = vrot.slane %v1166_v1, %v2084_v8 }
 0x3a2   :  { %v1275_v29 = vadd.f32 1.0, %v1974_v13  ;;  %v1388_v31 = vmul.f32 1.442695, %v1384_v4  ;;  %v1070_v32 = vsel %vm66_vm0, %v1066_v6, 0.0  ;;  %v1177_v11 = vrot.slane %v1167_v9, %v2084_v8 }
 0x3a3   :  { %v1976_v33 = vpop.eup %1975  ;;  %1983 = vrcp.f32 %v1278_v14  ;;  %v1381_v34 = vmul.f32 0.25, %v1365_v19  ;;  %v1071_v35 = vadd.f32 %v1070_v32, %v1069_v24  ;;  %v1186_v36 = vmul.f32 %v2077_v5, %v1173_v28 }
 0x3a4   :  { %v1276_v37 = vadd.f32 1.0, %v1976_v33  ;;  %1985 = vrcp.f32 %v1275_v29  ;;  %v1187_v38 = vmul.f32 %v1177_v11, %v2280_v26  ;;  %v1168_v39 = vmul.f32 %v1964_v49, %v2096_v18  ;;  %v1455_v33 = vld [vmem:[%s2441_s6] sm:$0xf] }
 0x3a5   :  { %v1385_v40 = vsub.f32 0.0, %v1381_v34  ;;  %1987 = vpow2.f32 %v1388_v31  ;;  %1072 = vadd.xlane.f32.xlu1 %v1071_v35  ;;  %v1190_v41 = vsel %vm66_vm0, %v1186_v36, 0.0  ;;  %v1169_v42 = vmul.f32 %v1966_v53, %v2098_v20  ;;  %1896 = vmatpush3.msk.msra.mxu0 %vm66_vm0, %v1455_v33 }
 0x3a6   :  { %v1978_v43 = vpop.eup %1977  ;;  %1989 = vrcp.f32 %v1276_v37  ;;  %v1191_v44 = vsel %vm66_vm0, %v1187_v38, 0.0  ;;  %v1181_v45 = vrot.slane %v1168_v39, %v2084_v8  ;;  %1905 = vmatprep.subr.mxu0 %v2026_v30 }
 0x3a7   :  { %v1980_v46 = vpop.eup %1979  ;;  %v1398_v47 = vadd.f32 1.0, %v1978_v43  ;;  %v1390_v48 = vmul.f32 1.442695, %v1385_v40  ;;  %v1192_v50 = vadd.f32 %v1191_v44, %v1190_v41  ;;  %v1185_v51 = vrot.slane %v1169_v42, %v2084_v8 }
 0x3a8   :  { %v1188_v18 = vmul.f32 %v2082_v7, %v1181_v45  ;;  %v1289_v49 = vmul.f32 %v1980_v46, %v2100_v21 }
 0x3a9   :  { %1991 = vrcp.f32 %v1398_v47  ;;  %1193 = vadd.xlane.f32.xlu0 %v1192_v50  ;;  %v1189_v20 = vmul.f32 %v1185_v51, %v2276_v25 }
 0x3aa   :  { %v1982_v52 = vpop.eup %1981  ;;  %1993 = vpow2.f32 %v1390_v48  ;;  %v1195_v53 = vsel %vm66_vm0, %v1188_v18, 0.0  ;;  %v1302_v16 = vrot.slane %v1289_v49, %v2084_v8 }
 0x3ab   :  { %v1399_v54 = vadd.f32 1.0, %v1982_v52  ;;  %v1196_v55 = vsel %vm66_vm0, %v1189_v20, 0.0 }
 0x3ac   :  { %v1197_v56 = vadd.f32 %v1196_v55, %v1195_v53  ;;  %v1309_v17 = vmul.f32 %v2082_v7, %v1302_v16 }
 0x3ad   :  { %v1984_v57 = vpop.eup %1983  ;;  %1995 = vrcp.f32 %v1399_v54 }
 0x3ae   :  { %v1986_v58 = vpop.eup %1985  ;;  %1198 = vadd.xlane.f32.xlu1 %v1197_v56  ;;  %v1290_v59 = vmul.f32 %v1984_v57, %v2102_v22  ;;  %v1316_v9 = vsel %vm66_vm0, %v1309_v17, 0.0 }
 0x3af   :  { %v1988_v60 = vpop.eup %1987  ;;  %v1287_v62 = vmul.f32 %v1986_v58, %v2100_v21  ;;  %v1458_v58 = vld [vmem:[%s2441_s6 + $0xc] sm:$0xf] }
 0x3b0   :  { %v1990_v63 = vpop.eup %1989  ;;  %v1396_v0 = vadd.f32 1.0, %v1988_v60  ;;  %v1306_v1 = vrot.slane %v1290_v59, %v2084_v8 }
 0x3b1   :  { %v1288_v3 = vmul.f32 %v1990_v63, %v2102_v22  ;;  %v1294_v4 = vrot.slane %v1287_v62, %v2084_v8 }
 0x3b2   :  { %1997 = vrcp.f32 %v1396_v0  ;;  %v1310_v6 = vmul.f32 %v1306_v1, %v2276_v25 }
 0x3b3   :  { %v1992_v13 = vpop.eup %1991  ;;  %v1298_v14 = vrot.slane %v1288_v3, %v2084_v8  ;;  %v1307_v19 = vmul.f32 %v2077_v5, %v1294_v4 }
 0x3b4   :  { %v1994_v24 = vpop.eup %1993  ;;  %v1317_v21 = vsel %vm66_vm0, %v1310_v6, 0.0  ;;  %v1410_v28 = vmul.f32 %v1992_v13, %v2104_v23 }
 0x3b5   :  { %v1397_v29 = vadd.f32 1.0, %v1994_v24  ;;  %v1318_v31 = vadd.f32 %v1317_v21, %v1316_v9  ;;  %v1308_v22 = vmul.f32 %v1298_v14, %v2280_v26  ;;  %v1311_v32 = vsel %vm66_vm0, %v1307_v19, 0.0 }
 0x3b6   :  { %v1423_v11 = vrot.slane %v1410_v28, %v2084_v8 }
 0x3b7   :  { %v1996_v34 = vpop.eup %1995  ;;  %1999 = vrcp.f32 %v1397_v29  ;;  %1319 = vadd.xlane.f32.xlu1 %v1318_v31  ;;  %v1312_v35 = vsel %vm66_vm0, %v1308_v22, 0.0 }
 0x3b8   :  { %v1313_v36 = vadd.f32 %v1312_v35, %v1311_v32  ;;  %v1411_v37 = vmul.f32 %v1996_v34, %v2112_v27  ;;  %v1430_v38 = vmul.f32 %v2082_v7, %v1423_v11  ;;  %v1456_v7 = vld [vmem:[%s2441_s6 + $0x4] sm:$0xf] }
 0x3b9   :  { %1901 = vmatpush3.msk.msra.mxu1 %vm66_vm0, %v1456_v7 }
 0x3ba   :  { %1314 = vadd.xlane.f32.xlu0 %v1313_v36  ;;  %v1427_v39 = vrot.slane %v1411_v37, %v2084_v8  ;;  %v1437_v42 = vsel %vm66_vm0, %v1430_v38, 0.0  ;;  %1910 = vmatprep.subr.mxu1 %v2026_v30 }
 0x3bc   :  { %v1998_v40 = vpop.eup %1997  ;;  %v1431_v41 = vmul.f32 %v1427_v39, %v2276_v25 }
 0x3bd   :  { %v1408_v43 = vmul.f32 %v1998_v40, %v2104_v23 }
 0x3be   :  { %v1438_v44 = vsel %vm66_vm0, %v1431_v41, 0.0 }
 0x3bf   :  { %v1439_v45 = vadd.f32 %v1438_v44, %v1437_v42  ;;  %v1415_v46 = vrot.slane %v1408_v43, %v2084_v8 }
 0x3c1   :  { %v2000_v47 = vpop.eup %1999  ;;  %1440 = vadd.xlane.f32.xlu1 %v1439_v45  ;;  %v1428_v48 = vmul.f32 %v2077_v5, %v1415_v46 }
 0x3c2   :  { %v1409_v25 = vmul.f32 %v2000_v47, %v2112_v27 }
 0x3c3   :  { %v1432_v51 = vsel %vm66_vm0, %v1428_v48, 0.0 }
 0x3c4   :  { %v1419_v23 = vrot.slane %v1409_v25, %v2084_v8  ;;  %v1457_v8 = vld [vmem:[%s2441_s6 + $0x8] sm:$0xf] }
 0x3c6   :  { %v1429_v50 = vmul.f32 %v1419_v23, %v2280_v26 }
 0x3c8   :  { %v1433_v18 = vsel %vm66_vm0, %v1429_v50, 0.0 }
 0x3c9   :  { %v1434_v49 = vadd.f32 %v1433_v18, %v1432_v51 }
 0x3cb   :  { %1435 = vadd.xlane.f32.xlu0 %v1434_v49 }
 0x42e   :  { %v1078_v20 = vpop.xlane.xlu0 %1077 }
 0x42f   :  { %v1088_v52 = vrot.slane %v1078_v20, %v2086_v10 }
 0x432   :  { %v1073_v53 = vpop.xlane.xlu1 %1072 }
 0x433   :  { %v1084_v16 = vrot.slane %v1073_v53, %v2086_v10 }
 0x435   :  { %v1089_v27 = vsel %vm247_vm2, %v1088_v52, %v1084_v16 }
 0x436   :  { %v1091_v5 = vmul.f32 %v2250_v61, %v1089_v27  ;;  %v1194_v26 = vpop.xlane.xlu0 %1193 }
 0x437   :  { %v1205_v54 = vrot.slane %v1194_v26, %v2086_v10 }
 0x438   :  { %1898 = vmatmul.mubr.msk.f32.vlgmr.msra.gmra.mrb[8].mxu0 %vm249_vm3, %v1091_v5 }
 0x439   :  { %1906 = vmatpush3.msk.msra.mxu0 %vm66_vm0, %v1457_v8  ;;  %1907 = vmatprep.mubr.msk.f32.mxu0 %vm2027_vm1, %v2026_v30 }
 0x43b   :  { %v1199_v55 = vpop.xlane.xlu1 %1198 }
 0x43c   :  { %v1209_v56 = vrot.slane %v1199_v55, %v2086_v10 }
 0x43e   :  { %v1210_v57 = vsel %vm247_vm2, %v1209_v56, %v1205_v54 }
 0x43f   :  { %v1212_v61 = vmul.f32 %v2256_v2, %v1210_v57 }
 0x441   :  { %1903 = vmatmul.mubr.msk.f32.vlgmr.msra.gmra.mrb[8].mxu1 %vm249_vm3, %v1212_v61 }
 0x442   :  { %1911 = vmatpush3.msk.msra.mxu1 %vm66_vm0, %v1458_v58  ;;  %1912 = vmatprep.mubr.msk.f32.mxu1 %vm2027_vm1, %v2026_v30 }
 0x444   :  { %v1320_v59 = vpop.xlane.xlu1 %1319 }
 0x445   :  { %v1330_v17 = vrot.slane %v1320_v59, %v2086_v10 }
 0x447   :  { %v1315_v60 = vpop.xlane.xlu0 %1314 }
 0x448   :  { %v1326_v62 = vrot.slane %v1315_v60, %v2086_v10 }
 0x44a   :  { %v1331_v63 = vsel %vm247_vm2, %v1330_v17, %v1326_v62 }
 0x44b   :  { %v1333_v2 = vmul.f32 %v2262_v12, %v1331_v63 }
 0x44d   :  { %1908 = vmatmul.mubr.msk.f32.vlgmr.msra.gmra.mrb[10].mxu0 %vm249_vm3, %v1333_v2 }
 0x44e   :  { %v1441_v0 = vpop.xlane.xlu1 %1440 }
 0x44f   :  { %v1451_v1 = vrot.slane %v1441_v0, %v2086_v10 }
 0x458   :  { %v1436_v3 = vpop.xlane.xlu0 %1435 }
 0x459   :  { %v1447_v4 = vrot.slane %v1436_v3, %v2086_v10 }
 0x45b   :  { %v1452_v30 = vsel %vm247_vm2, %v1451_v1, %v1447_v4 }
 0x45c   :  { %v1454_v6 = vmul.f32 %v2268_v15, %v1452_v30  ;;  %v1826_v15 = vld [vmem:[%s2442_s7] ss:$0 sm:$0xff] }
 0x45e   :  { %1913 = vmatmul.mubr.msk.f32.vlgmr.msra.gmra.mrb[10].mxu1 %vm249_vm3, %v1454_v6 }
 0x50b   :  { %v1531_v9 = vpop.f32.mrb[8].mxu0 }
 0x50c   :  { %v1899_v13 = vpop.f32.mrb[9].mxu0  ;;  %v1764_v19 = vsel %vm1763_vm4, %v1531_v9, 0.0 }
 0x514   :  { %v1607_v14 = vpop.f32.mrb[8].mxu1 }
 0x515   :  { %v1765_v12 = vsel %vm1763_vm4, %v1607_v14, 0.0  ;;  %v1904_v24 = vpop.f32.mrb[9].mxu1 }
 0x516   :  { %v1766_v21 = vadd.f32 %v1765_v12, %v1764_v19 }
 0x520   :  { %v1683_v28 = vpop.f32.mrb[10].mxu0 }
 0x521   :  { %v1767_v29 = vsel %vm1763_vm4, %v1683_v28, 0.0  ;;  %v1909_v31 = vpop.f32.mrb[11].mxu0 }
 0x522   :  { %v1768_v22 = vadd.f32 %v1767_v29, %v1766_v21 }
 0x531   :  { %v1759_v32 = vpop.f32.mrb[10].mxu1 }
 0x532   :  { %v1769_v10 = vsel %vm1763_vm4, %v1759_v32, 0.0  ;;  %v1914_v11 = vpop.f32.mrb[11].mxu1 }
 0x533   :  { %v1770_v33 = vadd.f32 %v1769_v10, %v1768_v22 }
 0x535   :  { %v1778_v34 = vadd.f32 %v1826_v15, %v1770_v33 }
 0x537   :  { %1779 = vst [vmem:[#allocation2] sm:$0x3] %v1778_v34 }
 0x538   :  { %2012 = shalt.err (!%p2009_p4)
}
 0x539   :  { %s2013_s24 = scalar_lea.hbm %s2443_s8, 32 }
 0x53a   :  { %p2014_p5 = scmp.ne.s32.totalorder %s2443_s8, %s2013_s24  ;;  %p2017_p6 = scmp.lt.u32.totalorder %s2013_s24, %s2443_s8 }
 0x53c   :  { %p2019_p7 = pnand %p2017_p6, %p2014_p5 }
 0x53e   :  { %2022 = shalt.err (!%p2019_p7)
}
 0x53f   :  { %1789 = dma.vmem_to_hbm [thread:$0]  %s1787_s20, 32, %s2443_s8, [#allocation3]  }
 0x540   :  { %2023 = dma.done.wait [#allocation3], 32  }
 0x541   :  { %2024 = vsyncadd [#allocation3], 4294967264 }
 0x542   :  { %1793 = vsyncpa [#allocation3], 1 }

</bundles_post_ra>
